<compile_context>
chip_gen: v6e
topology: v6e:2x2x1
jax: 0.10.0
libtpu: 0.0.40
codegen_flags: <defaults>
</compile_context>

<pallas_src>
import jax
import jax.numpy as jnp
from jax.experimental import pallas as pl
from jax.experimental.pallas import tpu as pltpu


def _round_up(a: int, b: int) -> int:
    return (a + b - 1) // b * b


def _pow2_divisor(n: int) -> int:
    return n & (-n)


_PACK_K_MAX = 256   # pack all taps into one dot while KH*KW*C_in <= this (small-C_in layers)


def basic_conv2d_new(x_nchw, conv_w, bn_gamma, bn_beta, bn_mean, bn_var,
                     *, stride=1, padding=1, eps=1e-3):
    """Conv2d(bias=False, stride=1) -> BatchNorm2d(eval) -> ReLU (PyTorch semantics)."""
    N, C_in, H, W = x_nchw.shape
    C_out, C_in_w, KH, KW = conv_w.shape
    assert C_in == C_in_w
    # TODO(synk): stride > 1 / dilation / grouped conv not implemented.
    assert stride == 1, "this kernel implements stride=1"

    Hp, Wp = H + 2 * padding, W + 2 * padding
    H_out, W_out = Hp - KH + 1, Wp - KW + 1

    # Flattened row pitch: multiple of 16 so kh*P tap offsets stay bf16 sublane-pack aligned.
    P = _round_up(Wp, 16)
    M_wide = H_out * P                      # "wide" output rows r = ho*P + s, s in [0, P)

    if M_wide >= 2048:
        TM = 512
    elif M_wide >= 512:
        TM = 256
    else:
        TM = _round_up(max(16, (M_wide + 1) // 2), 16)
    M_pad = _round_up(M_wide, TM)
    n_m = M_pad // TM
    align = _pow2_divisor(TM)

    # Lane padding of C_out: 128 for small layers (exact on v5e MXU); multiple of 256 for
    # larger layers so the 256-wide v6e/v7x MXU runs at full width.
    C_out_pad = 128 if C_out <= 128 else _round_up(C_out, 256)

    # ---- host glue: bf16 FIRST, then NCHW -> padded NHWC (row pitch P) -> flat rows ----
    xb = x_nchw.astype(jnp.bfloat16)
    xh = jnp.transpose(xb, (0, 2, 3, 1))                                     # (N, H, W, C)
    xh = jnp.pad(xh, ((0, 0), (padding, padding), (padding, padding + P - Wp), (0, 0)))
    xf = xh.reshape(N, Hp * P, C_in)                                         # (N, Hp*P, C)

    # ---- BN (eval) scale folded into weights (f32); shift kept for the epilogue ----
    scale = (bn_gamma / jnp.sqrt(bn_var + eps)).astype(jnp.float32)          # (C_out,)
    shift = (bn_beta - bn_mean * scale).astype(jnp.float32)
    w_f32 = jnp.transpose(conv_w, (2, 3, 1, 0)).astype(jnp.float32) * scale  # (KH,KW,Cin,Cout)
    shift_p = jnp.pad(shift, (0, C_out_pad - C_out)).reshape(1, C_out_pad)   # f32

    packed = (KH * KW * C_in) <= _PACK_K_MAX

    if packed:
        # ------------ small-C_in path: taps packed into the contraction dim ------------
        KWC = KW * C_in
        K_pack = KH * KWC
        K_pad = _round_up(K_pack, 128)
        L_in = _round_up(M_pad + (KH - 1) * P, 16)

        # Host KW pre-concat: x2[n, r, kw*C_in + c] = xpad_flat[n, r + kw, c]
        rows_need = L_in + KW - 1
        if rows_need > Hp * P:
            xf = jnp.pad(xf, ((0, 0), (0, rows_need - Hp * P), (0, 0)))
        x2 = jnp.concatenate([xf[:, kw:kw + L_in, :] for kw in range(KW)], axis=-1)

        w = jnp.pad(w_f32.reshape(K_pack, C_out),
                    ((0, K_pad - K_pack), (0, C_out_pad - C_out))).astype(jnp.bfloat16)

        def kernel(x_ref, w_ref, s_ref, o_ref, lhs_ref):
            # x_ref  : (L_in, KW*C_in) bf16  -- whole KW-packed image (VMEM-resident per n)
            # w_ref  : (K_pad, C_out_pad) bf16, BN-scale folded
            # s_ref  : (1, C_out_pad) f32 BN shift
            # o_ref  : (TM, C_out_pad) bf16 output tile
            # lhs_ref: (TM, K_pad) bf16 staging buffer for the packed LHS
            i = pl.program_id(1)
            base = pl.multiple_of(i * TM, align)
            if K_pack < K_pad:                    # keep dead lanes finite (they hit 0 weights)
                lhs_ref[:, K_pack:] = jnp.zeros((TM, K_pad - K_pack), lhs_ref.dtype)
            for kh in range(KH):                  # pack the KH row-taps along lanes
                lhs_ref[:, kh * KWC:(kh + 1) * KWC] = x_ref[pl.ds(base + kh * P, TM), :]
            y = jnp.dot(lhs_ref[...], w_ref[...], preferred_element_type=jnp.float32)
            y = y + s_ref[...]                    # fused BN shift (f32)
            o_ref[...] = jnp.maximum(y, 0.0).astype(o_ref.dtype)

        in_specs = [
            pl.BlockSpec((None, L_in, KWC), lambda n, i: (n, 0, 0)),
            pl.BlockSpec((K_pad, C_out_pad), lambda n, i: (0, 0)),
            pl.BlockSpec((1, C_out_pad), lambda n, i: (0, 0)),
        ]
        scratch_shapes = [pltpu.VMEM((TM, K_pad), jnp.bfloat16)]
        operands = (x2, w, shift_p)
    else:
        # ------------ large-C_in path: per-tap dots (K = C_in already MXU-wide) ------------
        L_in = _round_up(M_pad + (KH - 1) * P + (KW - 1), 16)
        if L_in > Hp * P:
            xf = jnp.pad(xf, ((0, 0), (0, L_in - Hp * P), (0, 0)))
        else:
            xf = xf[:, :L_in, :]
        taps = tuple(kh * P + kw for kh in range(KH) for kw in range(KW))

        w = jnp.pad(w_f32.reshape(KH * KW, C_in, C_out),
                    ((0, 0), (0, 0), (0, C_out_pad - C_out))).astype(jnp.bfloat16)

        def kernel(x_ref, w_ref, s_ref, o_ref, acc_ref):
            # acc_ref: (TM, C_out_pad) f32 VMEM accumulator (no register-file-sized live value)
            i = pl.program_id(1)
            base = pl.multiple_of(i * TM, align)
            acc_ref[...] = jnp.dot(x_ref[pl.ds(base + taps[0], TM), :], w_ref[0],
                                   preferred_element_type=jnp.float32)
            for t in range(1, len(taps)):
                acc_ref[...] += jnp.dot(x_ref[pl.ds(base + taps[t], TM), :], w_ref[t],
                                        preferred_element_type=jnp.float32)
            y = acc_ref[...] + s_ref[...]
            o_ref[...] = jnp.maximum(y, 0.0).astype(o_ref.dtype)

        in_specs = [
            pl.BlockSpec((None, L_in, C_in), lambda n, i: (n, 0, 0)),
            pl.BlockSpec((KH * KW, C_in, C_out_pad), lambda n, i: (0, 0, 0)),
            pl.BlockSpec((1, C_out_pad), lambda n, i: (0, 0)),
        ]
        scratch_shapes = [pltpu.VMEM((TM, C_out_pad), jnp.float32)]
        operands = (xf, w, shift_p)

    # TODO(synk): for very large feature maps the whole-image-resident input block should be
    # tiled along L (overlapping windows) to bound VMEM on v7x (64 MiB); fine at these sizes.
    out_wide = pl.pallas_call(
        kernel,
        out_shape=jax.ShapeDtypeStruct((N, M_pad, C_out_pad), jnp.bfloat16),
        grid_spec=pltpu.PrefetchScalarGridSpec(
            num_scalar_prefetch=0,
            grid=(N, n_m),
            in_specs=in_specs,
            out_specs=pl.BlockSpec((None, TM, C_out_pad), lambda n, i: (n, i, 0)),
            scratch_shapes=scratch_shapes,
        ),
        compiler_params=pltpu.CompilerParams(
            dimension_semantics=("parallel", "parallel"),
            vmem_limit_bytes=48 * 1024 * 1024,
        ),
    )(*operands)

    # crop junk (pitch) columns, padded rows and padded channels; back to NCHW f32
    out = out_wide[:, :M_wide, :C_out].reshape(N, H_out, P, C_out)[:, :, :W_out, :]
    return jnp.transpose(out, (0, 3, 1, 2)).astype(jnp.float32)


# ------------------------- references for the self-test -------------------------

def _ref_conv(x, w, stride, padding):
    return jax.lax.conv_general_dilated(
        x, w, window_strides=(stride, stride),
        padding=[(padding, padding), (padding, padding)],
        dimension_numbers=("NCHW", "OIHW", "NCHW"),
        precision=jax.lax.Precision.HIGHEST)


def reference_f32(x, conv_w, g, b, m, v, *, stride=1, padding=1, eps=1e-3):
    scale = g / jnp.sqrt(v + eps)
    shift = b - m * scale
    y = _ref_conv(x.astype(jnp.float32), conv_w.astype(jnp.float32), stride, padding)
    return jnp.maximum(y * scale.reshape(1, -1, 1, 1) + shift.reshape(1, -1, 1, 1), 0.0)


def reference_bf16(x, conv_w, g, b, m, v, *, stride=1, padding=1, eps=1e-3):
    # Mirrors the kernel's quantization: bf16 input / bf16 scale-folded weights,
    # f32 accumulation, bf16 output store.
    scale = g / jnp.sqrt(v + eps)
    shift = b - m * scale
    xq = x.astype(jnp.bfloat16).astype(jnp.float32)
    wq = (conv_w.astype(jnp.float32) * scale[:, None, None, None])
    wq = wq.astype(jnp.bfloat16).astype(jnp.float32)
    y = _ref_conv(xq, wq, stride, padding) + shift.reshape(1, -1, 1, 1)
    return jnp.maximum(y, 0.0).astype(jnp.bfloat16).astype(jnp.float32)


def _check(x, conv_w, g, b, m, v):
    out = jax.block_until_ready(jax.jit(basic_conv2d_new)(x, conv_w, g, b, m, v))
    N, _, H, W = x.shape
    C_out = conv_w.shape[0]
    assert out.shape == (N, C_out, H, W), out.shape
    ref_q = reference_bf16(x, conv_w, g, b, m, v)
    ref_f = reference_f32(x, conv_w, g, b, m, v)
    amp = float(jnp.max(jnp.abs(ref_q))) + 1.0
    err_q = float(jnp.max(jnp.abs(out - ref_q)))   # tight: same bf16 quantization/output cast
    err_f = float(jnp.max(jnp.abs(out - ref_f)))   # loose: bf16 operand/output rounding vs f32
    assert err_q < 1.5e-2 * amp, f"mismatch vs bf16-matched reference: {err_q} (amp {amp})"
    assert err_f < 8e-2 * amp, f"mismatch vs f32 reference: {err_f} (amp {amp})"
    return out


if __name__ == "__main__":
    key = jax.random.PRNGKey(0)

    def make(k, N, C_in, H, W, C_out, KH, KW, wscale):
        kx, kw_, kg, kb, km, kv = jax.random.split(k, 6)
        x = jax.random.normal(kx, (N, C_in, H, W), dtype=jnp.float32)
        conv_w = jax.random.normal(kw_, (C_out, C_in, KH, KW), dtype=jnp.float32) * wscale
        g = jax.random.normal(kg, (C_out,), dtype=jnp.float32) * 0.1 + 1.0
        b = jax.random.normal(kb, (C_out,), dtype=jnp.float32) * 0.1
        m = jax.random.normal(km, (C_out,), dtype=jnp.float32) * 0.1
        v = jax.nn.softplus(jax.random.normal(kv, (C_out,), dtype=jnp.float32)) + 0.5
        return x, conv_w, g, b, m, v

    k1, k2 = jax.random.split(key)
    # Packed-taps path (small C_in): BasicConv2d(4 -> 8, k=3, pad=1, bias=False), batch 2.
    _check(*make(k1, 2, 4, 16, 16, 8, 3, 3, 0.1))
    # Per-tap path (larger C_in): BasicConv2d(32 -> 16, k=3, pad=1, bias=False), batch 1.
    _check(*make(k2, 1, 32, 8, 8, 16, 3, 3, 0.05))

    print("KERNEL_OK")
</pallas_src>

<mosaic_0001>
module attributes {stable_mosaic.version = 11 : i64} {
  func.func @kernel(%arg0: i32, %arg1: i32, %arg2: memref<1x576x12xbf16, #tpu.memory_space<vmem>>, %arg3: memref<128x128xbf16, #tpu.memory_space<vmem>>, %arg4: memref<1x128xf32, #tpu.memory_space<vmem>>, %arg5: memref<1x256x128xbf16, #tpu.memory_space<vmem>>, %arg6: memref<256x128xbf16, #tpu.memory_space<vmem>>) attributes {dimension_semantics = [#tpu.dimension_semantics<parallel>, #tpu.dimension_semantics<parallel>], iteration_bounds = array<i64: 2, 2>, scalar_prefetch = 0 : i64, scratch_operands = 1 : i64, tpu.core_type = #tpu.core_type<tc>, window_params = [{transform_indices = @transform_0, window_bounds = array<i64: 1, 576, 12>}, {pipeline_mode = #tpu.pipeline_mode<synchronous>, transform_indices = @transform_1, window_bounds = array<i64: 128, 128>}, {pipeline_mode = #tpu.pipeline_mode<synchronous>, transform_indices = @transform_2, window_bounds = array<i64: 1, 128>}, {transform_indices = @transform_3, window_bounds = array<i64: 1, 256, 128>}]} {
    %c256_i32 = arith.constant 256 : i32
    %0 = arith.muli %arg1, %c256_i32 : i32
    %1 = tpu.assume_multiple %0, 256 : i32
    %cst = arith.constant 0.000000e+00 : bf16
    %2 = vector.broadcast %cst : bf16 to vector<256x92xbf16>
    %c0 = arith.constant 0 : index
    %c36 = arith.constant 36 : index
    %3 = vector.load %arg6[%c0, %c36] : memref<256x128xbf16, #tpu.memory_space<vmem>>, vector<256x92xbf16>
    tpu.vector_store %arg6[%c0, %c36], %2 {strides = array<i32>} : memref<256x128xbf16, #tpu.memory_space<vmem>>, vector<256x92xbf16>,
    %c0_i32 = arith.constant 0 : i32
    %4 = arith.addi %1, %c0_i32 : i32
    %c0_0 = arith.constant 0 : index
    %5 = arith.index_cast %4 : i32 to index
    %c0_1 = arith.constant 0 : index
    %6 = vector.load %arg2[%c0_0, %5, %c0_1] : memref<1x576x12xbf16, #tpu.memory_space<vmem>>, vector<1x256x12xbf16>
    %7 = vector.shape_cast %6 : vector<1x256x12xbf16> to vector<256x12xbf16>
    %c0_2 = arith.constant 0 : index
    %c0_3 = arith.constant 0 : index
    %8 = vector.load %arg6[%c0_2, %c0_3] : memref<256x128xbf16, #tpu.memory_space<vmem>>, vector<256x12xbf16>
    tpu.vector_store %arg6[%c0_2, %c0_3], %7 {strides = array<i32>} : memref<256x128xbf16, #tpu.memory_space<vmem>>, vector<256x12xbf16>,
    %c32_i32 = arith.constant 32 : i32
    %9 = arith.addi %1, %c32_i32 : i32
    %c0_4 = arith.constant 0 : index
    %10 = arith.index_cast %9 : i32 to index
    %c0_5 = arith.constant 0 : index
    %11 = vector.load %arg2[%c0_4, %10, %c0_5] : memref<1x576x12xbf16, #tpu.memory_space<vmem>>, vector<1x256x12xbf16>
    %12 = vector.shape_cast %11 : vector<1x256x12xbf16> to vector<256x12xbf16>
    %c0_6 = arith.constant 0 : index
    %c12 = arith.constant 12 : index
    %13 = vector.load %arg6[%c0_6, %c12] : memref<256x128xbf16, #tpu.memory_space<vmem>>, vector<256x12xbf16>
    tpu.vector_store %arg6[%c0_6, %c12], %12 {strides = array<i32>} : memref<256x128xbf16, #tpu.memory_space<vmem>>, vector<256x12xbf16>,
    %c64_i32 = arith.constant 64 : i32
    %14 = arith.addi %1, %c64_i32 : i32
    %c0_7 = arith.constant 0 : index
    %15 = arith.index_cast %14 : i32 to index
    %c0_8 = arith.constant 0 : index
    %16 = vector.load %arg2[%c0_7, %15, %c0_8] : memref<1x576x12xbf16, #tpu.memory_space<vmem>>, vector<1x256x12xbf16>
    %17 = vector.shape_cast %16 : vector<1x256x12xbf16> to vector<256x12xbf16>
    %c0_9 = arith.constant 0 : index
    %c24 = arith.constant 24 : index
    %18 = vector.load %arg6[%c0_9, %c24] : memref<256x128xbf16, #tpu.memory_space<vmem>>, vector<256x12xbf16>
    tpu.vector_store %arg6[%c0_9, %c24], %17 {strides = array<i32>} : memref<256x128xbf16, #tpu.memory_space<vmem>>, vector<256x12xbf16>,
    %c0_10 = arith.constant 0 : index
    %c0_11 = arith.constant 0 : index
    %19 = vector.load %arg6[%c0_10, %c0_11] : memref<256x128xbf16, #tpu.memory_space<vmem>>, vector<256x128xbf16>
    %c0_12 = arith.constant 0 : index
    %c0_13 = arith.constant 0 : index
    %20 = vector.load %arg3[%c0_12, %c0_13] : memref<128x128xbf16, #tpu.memory_space<vmem>>, vector<128x128xbf16>
    %cst_14 = arith.constant dense<0.000000e+00> : vector<256x128xf32>
    %21 = tpu.matmul %19, %20, %cst_14 {dimension_numbers = #tpu.dot_dimension_numbers<[1], [0], [0], [1], [0, 0, 1, 1], [], []>} : vector<256x128xbf16>, vector<128x128xbf16>, vector<256x128xf32> -> vector<256x128xf32>
    %c0_15 = arith.constant 0 : index
    %c0_16 = arith.constant 0 : index
    %22 = vector.load %arg4[%c0_15, %c0_16] : memref<1x128xf32, #tpu.memory_space<vmem>>, vector<1x128xf32>
    %23 = vector.broadcast %22 : vector<1x128xf32> to vector<256x128xf32>
    %24 = arith.addf %21, %23 : vector<256x128xf32>
    %cst_17 = arith.constant 0.000000e+00 : f32
    %25 = vector.broadcast %cst_17 : f32 to vector<256x128xf32>
    %26 = arith.maximumf %24, %25 : vector<256x128xf32>
    %27 = arith.truncf %26 : vector<256x128xf32> to vector<256x128xbf16>
    %c0_18 = arith.constant 0 : index
    %c0_19 = arith.constant 0 : index
    %c0_20 = arith.constant 0 : index
    %28 = vector.load %arg5[%c0_18, %c0_19, %c0_20] : memref<1x256x128xbf16, #tpu.memory_space<vmem>>, vector<1x256x128xbf16>
    %29 = vector.shape_cast %28 : vector<1x256x128xbf16> to vector<256x128xbf16>
    %30 = vector.shape_cast %27 : vector<256x128xbf16> to vector<1x256x128xbf16>
    tpu.vector_store %arg5[%c0_18, %c0_19, %c0_20], %30 {strides = array<i32>} : memref<1x256x128xbf16, #tpu.memory_space<vmem>>, vector<1x256x128xbf16>,
    return
  }
  func.func @transform_0(%arg0: i32, %arg1: i32) -> (i32, i32, i32) {
    %c0_i32 = arith.constant 0 : i32
    %c0_i32_0 = arith.constant 0 : i32
    %c0_i32_1 = arith.constant 0 : i32
    return %arg0, %c0_i32, %c0_i32_0 : i32, i32, i32
  }
  func.func @transform_1(%arg0: i32, %arg1: i32) -> (i32, i32) {
    %c0_i32 = arith.constant 0 : i32
    %c0_i32_0 = arith.constant 0 : i32
    %c0_i32_1 = arith.constant 0 : i32
    return %c0_i32, %c0_i32_0 : i32, i32
  }
  func.func @transform_2(%arg0: i32, %arg1: i32) -> (i32, i32) {
    %c0_i32 = arith.constant 0 : i32
    %c0_i32_0 = arith.constant 0 : i32
    %c0_i32_1 = arith.constant 0 : i32
    return %c0_i32, %c0_i32_0 : i32, i32
  }
  func.func @transform_3(%arg0: i32, %arg1: i32) -> (i32, i32, i32) {
    %c0_i32 = arith.constant 0 : i32
    %c0_i32_0 = arith.constant 0 : i32
    return %arg0, %arg1, %c0_i32 : i32, i32, i32
  }
}

</mosaic_0001>

<bundles_post_ra>
// kernel: basic_conv2d_new.1
= control target key start
LH: loop header
LB: loop body
LE: loop exit
PB: predicated region body
PF: predicated region fallthrough
CT: control target
= control target key end

     0   :  { %s1754_s12 = smov 0   ;;  %s1756_s13 = smov 0   ;;  %s2204_s0 = inlined_call_operand.vmem [shape: bf16[2,576,12], index: 0, kind: input, shape index: {}]   ;;  %s2205_s1 = inlined_call_operand.vmem [shape: bf16[128,128], index: 1, kind: input, shape index: {}]   ;;  %s2206_s2 = inlined_call_operand.vmem [shape: f32[1,128], index: 2, kind: input, shape index: {}]   ;;  %s2207_s3 = inlined_call_operand.vmem [shape: bf16[2,512,128], index: 3, kind: output, shape index: {}]  }
   0x1   :  { %s1758_s14 = smov 0   ;;  %s1760_s15 = smov 0  }
   0x2   :  { %s1762_s16 = smov 0  }
   0x3 LB: > { %s22_s17 = sadd.s32 1, %s1721_s14  ;;  %s25_s18 = sadd.s32 1, %s1725_s15  ;;  %s1729_s16 = sphi %s1762_s16, %s13_s16   ;;  %s1725_s15 = sphi %s1760_s15, %s2211_s15   ;;  %s1721_s14 = sphi %s1758_s14, %s2210_s14   ;;  %s1717_s13 = sphi %s1756_s13, %s2209_s13   ;;  %s1713_s12 = sphi %s1754_s12, %s2208_s12  }
   0x4   : > { %p23_p0 = scmp.ge.s32.totalorder %s22_s17, 2  ;;  %p1340_p1 = scmp.ge.s32.totalorder %s1729_s16, 1 }
   0x5   : > { %p151_p2 = scmp.lt.s32.totalorder %s1729_s16, 5 }
   0x6   : > { %s2213_s17 = smov (%p23_p0, %s22_s17), 0  ;;  %s2215_s18 = smov (!%p23_p0, %s25_s18), %s1725_s15 }
   0x7   : > { %p152_p3 = pnand %p1340_p1, %p151_p2  ;;  %p27_p4 = scmp.ge.s32.totalorder %s2215_s18, 2 }
   0x8   : > { %p179_p5 = scmp.lt.s32.totalorder (!%p152_p3), %s1717_s13, 1  ;;  %s1790_s19 = sshll.u32 (!%p152_p3), %s1713_s12, 8 }
   0x9   : > { %s2217_s18 = smov (%p27_p4, %s2215_s18), 0  ;;  %155 = sbr.rel (%p152_p3) target bundleno = 474 (0x1da), region = 32 }
   0xa   : > { %s298_s20 = sadd.s32 (!%p152_p3), 32, %s1790_s19  ;;  %s1732_s7 = smov (!%p152_p3), 12  }
   0xb   : > { %s299_s23 = sshra.s32 (!%p152_p3), %s298_s20, 3  ;;  %s496_s8 = sadd.s32 (!%p152_p3), 64, %s1790_s19 }
   0xc   : > { %s1347_s27 = sshll.u32 (!%p152_p3), %s299_s23, 2  ;;  %s497_s11 = sshra.s32 (!%p152_p3), %s496_s8, 3 }
   0xd   : > { %s1348_s20 = sshll.u32 (!%p152_p3), %s497_s11, 2  ;;  %s229_s22 = sshra.s32 (!%p152_p3), %s1790_s19, 3 }
   0xe   : > { %vm196_vm0 = vcmask 1043744   ;;  %v1731_v0 = vmov 0   ;;  %s2219_s13 = smov (!%p179_p5, %s1717_s13), 1  ;;  %v1667_v1 = vld [vmem:[%s2205_s1 + $0x38] sm:$0xff]   ;;  %v1668_v2 = vld [vmem:[%s2205_s1 + $0x30] sm:$0xff]   ;;  %v1669_v3 = vld [vmem:[%s2205_s1 + $0x28] sm:$0xff]  }
   0xf   : > { %213 = vst.msk [vmem:[#allocation2 + $0x40] sm:$0xf] %vm196_vm0, %v1731_v0  ;;  %197 = vst.msk [vmem:[#allocation2] sm:$0xf] %vm196_vm0, %v1731_v0  ;;  %s1623_s26 = smul.u32 288, %s2219_s13  ;;  %1559 = vmatprep.subr.bf16.mxu0 %v1667_v1  ;;  %1607 = vmatprep.subr.bf16.mxu1 %v1667_v1  ;;  %v1670_v8 = vld [vmem:[%s2205_s1 + $0x20] sm:$0xff]  }
  0x10   : > { %198 = vst.msk [vmem:[#allocation2 + $0x4] sm:$0xf] %vm196_vm0, %v1731_v0  ;;  %199 = vst.msk [vmem:[#allocation2 + $0x8] sm:$0xf] %vm196_vm0, %v1731_v0  ;;  %1560 = vmatpush3.bf16.msra.mxu0 %v1667_v1  ;;  %1615 = vmatpush3.bf16.msra.mxu1 %v1667_v1  ;;  %s1346_s23 = sshll.u32 %s229_s22, 2  ;;  %s1733_s24 = smov 24  }
  0x11   : > { %200 = vst.msk [vmem:[#allocation2 + $0xc] sm:$0xf] %vm196_vm0, %v1731_v0  ;;  %201 = vst.msk [vmem:[#allocation2 + $0x10] sm:$0xf] %vm196_vm0, %v1731_v0  ;;  %s1842_s30 = scalar_lea.vmem %s2204_s0, %s1623_s26  ;;  %1561 = vmatprep.subr.bf16.mxu0 %v1668_v2  ;;  %1608 = vmatprep.subr.bf16.mxu1 %v1668_v2  ;;  %vm265_vm1 = vcmask 93184   ;;  %v1671_v29 = vld [vmem:[%s2205_s1 + $0x18] sm:$0xff]  }
  0x12   : > { %202 = vst.msk [vmem:[#allocation2 + $0x14] sm:$0xf] %vm196_vm0, %v1731_v0  ;;  %203 = vst.msk [vmem:[#allocation2 + $0x18] sm:$0xf] %vm196_vm0, %v1731_v0  ;;  %s1845_s4 = scalar_lea.vmem %s1842_s30, %s1347_s27  ;;  %s1869_s21 = scalar_lea.vmem %s1842_s30, %s1348_s20  ;;  %v1672_v30 = vld [vmem:[%s2205_s1 + $0x10] sm:$0xff]   ;;  %v1673_v39 = vld [vmem:[%s2205_s1 + $0x8] sm:$0xff]  }
  0x13   : > { %204 = vst.msk [vmem:[#allocation2 + $0x1c] sm:$0xf] %vm196_vm0, %v1731_v0  ;;  %205 = vst.msk [vmem:[#allocation2 + $0x20] sm:$0xf] %vm196_vm0, %v1731_v0  ;;  %v319_v4 = vld [vmem:[%s1845_s4 + $0x40] sm:$0xf]  ;;  %s1879_s25 = scalar_lea.vmem %s1842_s30, %s1346_s23 }
  0x14   : > { %206 = vst.msk [vmem:[#allocation2 + $0x24] sm:$0xf] %vm196_vm0, %v1731_v0  ;;  %207 = vst.msk [vmem:[#allocation2 + $0x28] sm:$0xf] %vm196_vm0, %v1731_v0  ;;  %v303_v5 = vld [vmem:[%s1845_s4] sm:$0xf]  ;;  %399 = vrot.lane.b32.xlu1 %v319_v4, %s1732_s7  ;;  %1562 = vmatpush3.bf16.msra.mxu0 %v1668_v2 }
  0x15   : > { %208 = vst.msk [vmem:[#allocation2 + $0x2c] sm:$0xf] %vm196_vm0, %v1731_v0  ;;  %209 = vst.msk [vmem:[#allocation2 + $0x30] sm:$0xf] %vm196_vm0, %v1731_v0  ;;  %367 = vrot.lane.b32.xlu0 %v303_v5, %s1732_s7  ;;  %v320_v6 = vld [vmem:[%s1845_s4 + $0x44] sm:$0xf]  ;;  %1616 = vmatpush3.bf16.msra.mxu1 %v1668_v2 }
  0x16   : > { %210 = vst.msk [vmem:[#allocation2 + $0x34] sm:$0xf] %vm196_vm0, %v1731_v0  ;;  %211 = vst.msk [vmem:[#allocation2 + $0x38] sm:$0xf] %vm196_vm0, %v1731_v0  ;;  %v304_v7 = vld [vmem:[%s1845_s4 + $0x4] sm:$0xf]  ;;  %1563 = vmatprep.subr.bf16.mxu0 %v1669_v3  ;;  %1609 = vmatprep.subr.bf16.mxu1 %v1669_v3 }
  0x17   : > { %212 = vst.msk [vmem:[#allocation2 + $0x3c] sm:$0xf] %vm196_vm0, %v1731_v0  ;;  %214 = vst.msk [vmem:[#allocation2 + $0x44] sm:$0xf] %vm196_vm0, %v1731_v0  ;;  %v306_v9 = vld [vmem:[%s1845_s4 + $0xc] sm:$0xf] }
  0x18   : > { %215 = vst.msk [vmem:[#allocation2 + $0x48] sm:$0xf] %vm196_vm0, %v1731_v0  ;;  %216 = vst.msk [vmem:[#allocation2 + $0x4c] sm:$0xf] %vm196_vm0, %v1731_v0  ;;  %401 = vrot.lane.b32.xlu1 %v320_v6, %s1732_s7  ;;  %v305_v10 = vld [vmem:[%s1845_s4 + $0x8] sm:$0xf]  ;;  %1564 = vmatpush3.bf16.msra.mxu0 %v1669_v3 }
  0x19   : > { %217 = vst.msk [vmem:[#allocation2 + $0x50] sm:$0xf] %vm196_vm0, %v1731_v0  ;;  %218 = vst.msk [vmem:[#allocation2 + $0x54] sm:$0xf] %vm196_vm0, %v1731_v0  ;;  %369 = vrot.lane.b32.xlu0 %v304_v7, %s1732_s7  ;;  %1617 = vmatpush3.bf16.msra.mxu1 %v1669_v3  ;;  %v322_v11 = vld [vmem:[%s1845_s4 + $0x4c] sm:$0xf] }
  0x1a   : > { %219 = vst.msk [vmem:[#allocation2 + $0x58] sm:$0xf] %vm196_vm0, %v1731_v0  ;;  %220 = vst.msk [vmem:[#allocation2 + $0x5c] sm:$0xf] %vm196_vm0, %v1731_v0  ;;  %1565 = vmatprep.subr.bf16.mxu0 %v1670_v8  ;;  %1610 = vmatprep.subr.bf16.mxu1 %v1670_v8  ;;  %v321_v12 = vld [vmem:[%s1845_s4 + $0x48] sm:$0xf] }
  0x1b   : > { %221 = vst.msk [vmem:[#allocation2 + $0x60] sm:$0xf] %vm196_vm0, %v1731_v0  ;;  %222 = vst.msk [vmem:[#allocation2 + $0x64] sm:$0xf] %vm196_vm0, %v1731_v0  ;;  %v502_v13 = vld [vmem:[%s1869_s21 + $0x4] sm:$0xf] }
  0x1c   : > { %223 = vst.msk [vmem:[#allocation2 + $0x68] sm:$0xf] %vm196_vm0, %v1731_v0  ;;  %224 = vst.msk [vmem:[#allocation2 + $0x6c] sm:$0xf] %vm196_vm0, %v1731_v0  ;;  %373 = vrot.lane.b32.xlu1 %v306_v9, %s1732_s7  ;;  %1566 = vmatpush3.bf16.msra.mxu0 %v1670_v8  ;;  %v501_v14 = vld [vmem:[%s1869_s21] sm:$0xf] }
  0x1d   : > { %225 = vst.msk [vmem:[#allocation2 + $0x70] sm:$0xf] %vm196_vm0, %v1731_v0  ;;  %226 = vst.msk [vmem:[#allocation2 + $0x74] sm:$0xf] %vm196_vm0, %v1731_v0  ;;  %371 = vrot.lane.b32.xlu0 %v305_v10, %s1732_s7  ;;  %1618 = vmatpush3.bf16.msra.mxu1 %v1670_v8  ;;  %v518_v15 = vld [vmem:[%s1869_s21 + $0x44] sm:$0xf] }
  0x1e   : > { %227 = vst.msk [vmem:[#allocation2 + $0x78] sm:$0xf] %vm196_vm0, %v1731_v0  ;;  %228 = vst.msk [vmem:[#allocation2 + $0x7c] sm:$0xf] %vm196_vm0, %v1731_v0  ;;  %v517_v16 = vld [vmem:[%s1869_s21 + $0x40] sm:$0xf]  ;;  %1567 = vmatprep.subr.bf16.mxu0 %v1671_v29  ;;  %1611 = vmatprep.subr.bf16.mxu1 %v1671_v29 }
  0x1f   : > { %v249_v17 = vld [vmem:[%s1879_s25 + $0x40] sm:$0xf]  ;;  %v504_v19 = vld [vmem:[%s1869_s21 + $0xc] sm:$0xf]  ;;  %v503_v20 = vld [vmem:[%s1869_s21 + $0x8] sm:$0xf] }
  0x20   : > { %405 = vrot.lane.b32.xlu1 %v322_v11, %s1732_s7  ;;  %v233_v18 = vld [vmem:[%s1879_s25] sm:$0xf]  ;;  %282 = vst.msk [vmem:[#allocation2 + $0x40] sm:$0xf] %vm265_vm1, %v249_v17  ;;  %v250_v21 = vld [vmem:[%s1879_s25 + $0x44] sm:$0xf]  ;;  %1568 = vmatpush3.bf16.msra.mxu0 %v1671_v29 }
  0x21   : > { %403 = vrot.lane.b32.xlu0 %v321_v12, %s1732_s7  ;;  %266 = vst.msk [vmem:[#allocation2] sm:$0xf] %vm265_vm1, %v233_v18  ;;  %283 = vst.msk [vmem:[#allocation2 + $0x44] sm:$0xf] %vm265_vm1, %v250_v21  ;;  %v234_v22 = vld [vmem:[%s1879_s25 + $0x4] sm:$0xf]  ;;  %1619 = vmatpush3.bf16.msra.mxu1 %v1671_v29 }
  0x22   : > { %267 = vst.msk [vmem:[#allocation2 + $0x4] sm:$0xf] %vm265_vm1, %v234_v22  ;;  %v236_v23 = vld [vmem:[%s1879_s25 + $0xc] sm:$0xf]  ;;  %v235_v24 = vld [vmem:[%s1879_s25 + $0x8] sm:$0xf]  ;;  %1569 = vmatprep.subr.bf16.mxu0 %v1672_v30  ;;  %1612 = vmatprep.subr.bf16.mxu1 %v1672_v30 }
  0x23   : > { %v520_v25 = vld [vmem:[%s1869_s21 + $0x4c] sm:$0xf]  ;;  %269 = vst.msk [vmem:[#allocation2 + $0xc] sm:$0xf] %vm265_vm1, %v236_v23  ;;  %268 = vst.msk [vmem:[#allocation2 + $0x8] sm:$0xf] %vm265_vm1, %v235_v24 }
  0x24   : > { %567 = vrot.lane.b32.xlu1 %v502_v13, %s1733_s24  ;;  %v252_v26 = vld [vmem:[%s1879_s25 + $0x4c] sm:$0xf]  ;;  %v519_v27 = vld [vmem:[%s1869_s21 + $0x48] sm:$0xf]  ;;  %v308_v31 = vld [vmem:[%s1845_s4 + $0x14] sm:$0xf]  ;;  %1570 = vmatpush3.bf16.msra.mxu0 %v1672_v30 }
  0x25   : > { %565 = vrot.lane.b32.xlu0 %v501_v14, %s1733_s24  ;;  %285 = vst.msk [vmem:[#allocation2 + $0x4c] sm:$0xf] %vm265_vm1, %v252_v26  ;;  %v251_v28 = vld [vmem:[%s1879_s25 + $0x48] sm:$0xf]  ;;  %v307_v32 = vld [vmem:[%s1845_s4 + $0x10] sm:$0xf]  ;;  %1620 = vmatpush3.bf16.msra.mxu1 %v1672_v30 }
  0x26   : > { %284 = vst.msk [vmem:[#allocation2 + $0x48] sm:$0xf] %vm265_vm1, %v251_v28  ;;  %v238_v33 = vld [vmem:[%s1879_s25 + $0x14] sm:$0xf]  ;;  %v237_v34 = vld [vmem:[%s1879_s25 + $0x10] sm:$0xf]  ;;  %1571 = vmatprep.subr.bf16.mxu0 %v1673_v39  ;;  %1613 = vmatprep.subr.bf16.mxu1 %v1673_v39 }
  0x27   : > { %271 = vst.msk [vmem:[#allocation2 + $0x14] sm:$0xf] %vm265_vm1, %v238_v33  ;;  %v254_v35 = vld [vmem:[%s1879_s25 + $0x54] sm:$0xf]  ;;  %270 = vst.msk [vmem:[#allocation2 + $0x10] sm:$0xf] %vm265_vm1, %v237_v34 }
  0x28   : > { %599 = vrot.lane.b32.xlu1 %v518_v15, %s1733_s24  ;;  %287 = vst.msk [vmem:[#allocation2 + $0x54] sm:$0xf] %vm265_vm1, %v254_v35  ;;  %v253_v36 = vld [vmem:[%s1879_s25 + $0x50] sm:$0xf]  ;;  %v240_v37 = vld [vmem:[%s1879_s25 + $0x1c] sm:$0xf]  ;;  %1572 = vmatpush3.bf16.msra.mxu0 %v1673_v39 }
  0x29   : > { %597 = vrot.lane.b32.xlu0 %v517_v16, %s1733_s24  ;;  %v239_v38 = vld [vmem:[%s1879_s25 + $0x18] sm:$0xf]  ;;  %286 = vst.msk [vmem:[#allocation2 + $0x50] sm:$0xf] %vm265_vm1, %v253_v36  ;;  %273 = vst.msk [vmem:[#allocation2 + $0x1c] sm:$0xf] %vm265_vm1, %v240_v37  ;;  %1621 = vmatpush3.bf16.msra.mxu1 %v1673_v39 }
  0x2a   : > { %272 = vst.msk [vmem:[#allocation2 + $0x18] sm:$0xf] %vm265_vm1, %v239_v38  ;;  %v256_v40 = vld [vmem:[%s1879_s25 + $0x5c] sm:$0xf]  ;;  %v255_v41 = vld [vmem:[%s1879_s25 + $0x58] sm:$0xf] }
  0x2b   : > { %289 = vst.msk [vmem:[#allocation2 + $0x5c] sm:$0xf] %vm265_vm1, %v256_v40  ;;  %288 = vst.msk [vmem:[#allocation2 + $0x58] sm:$0xf] %vm265_vm1, %v255_v41  ;;  %v324_v42 = vld [vmem:[%s1845_s4 + $0x54] sm:$0xf] }
  0x2c   : > { %571 = vrot.lane.b32.xlu1 %v504_v19, %s1733_s24  ;;  %v323_v43 = vld [vmem:[%s1845_s4 + $0x50] sm:$0xf]  ;;  %v1675_v44 = vld [vmem:[%s2205_s1] sm:$0xff]   ;;  %v310_v45 = vld [vmem:[%s1845_s4 + $0x1c] sm:$0xf]  ;;  %vm463_vm2 = vcmask 191584  }
  0x2d   : > { %569 = vrot.lane.b32.xlu0 %v503_v20, %s1733_s24  ;;  %v309_v46 = vld [vmem:[%s1845_s4 + $0x18] sm:$0xf]  ;;  %1573 = vmatprep.subr.bf16.mxu0 %v1675_v44  ;;  %v326_v47 = vld [vmem:[%s1845_s4 + $0x5c] sm:$0xf]  ;;  %v506_v49 = vld [vmem:[%s1869_s21 + $0x14] sm:$0xf] }
  0x2e   : > { %1614 = vmatprep.subr.bf16.mxu1 %v1675_v44  ;;  %v325_v48 = vld [vmem:[%s1845_s4 + $0x58] sm:$0xf]  ;;  %1574 = vmatpush3.bf16.msra.mxu0 %v1675_v44  ;;  %v505_v50 = vld [vmem:[%s1869_s21 + $0x10] sm:$0xf]  ;;  %v522_v51 = vld [vmem:[%s1869_s21 + $0x54] sm:$0xf] }
  0x2f   : > { %1622 = vmatpush3.bf16.msra.mxu1 %v1675_v44  ;;  %v521_v52 = vld [vmem:[%s1869_s21 + $0x50] sm:$0xf]  ;;  %v242_v53 = vld [vmem:[%s1879_s25 + $0x24] sm:$0xf]  ;;  %v241_v54 = vld [vmem:[%s1879_s25 + $0x20] sm:$0xf] }
  0x30   : > { %603 = vrot.lane.b32.xlu1 %v520_v25, %s1733_s24  ;;  %275 = vst.msk [vmem:[#allocation2 + $0x24] sm:$0xf] %vm265_vm1, %v242_v53  ;;  %274 = vst.msk [vmem:[#allocation2 + $0x20] sm:$0xf] %vm265_vm1, %v241_v54  ;;  %v508_v55 = vld [vmem:[%s1869_s21 + $0x1c] sm:$0xf] }
  0x31   : > { %601 = vrot.lane.b32.xlu0 %v519_v27, %s1733_s24  ;;  %v507_v56 = vld [vmem:[%s1869_s21 + $0x18] sm:$0xf]  ;;  %v258_v57 = vld [vmem:[%s1879_s25 + $0x64] sm:$0xf]  ;;  %v257_v58 = vld [vmem:[%s1879_s25 + $0x60] sm:$0xf] }
  0x32   : > { %291 = vst.msk [vmem:[#allocation2 + $0x64] sm:$0xf] %vm265_vm1, %v258_v57  ;;  %290 = vst.msk [vmem:[#allocation2 + $0x60] sm:$0xf] %vm265_vm1, %v257_v58  ;;  %v524_v59 = vld [vmem:[%s1869_s21 + $0x5c] sm:$0xf] }
  0x33   : > { %v523_v60 = vld [vmem:[%s1869_s21 + $0x58] sm:$0xf]  ;;  %v244_v61 = vld [vmem:[%s1879_s25 + $0x2c] sm:$0xf]  ;;  %v243_v62 = vld [vmem:[%s1879_s25 + $0x28] sm:$0xf] }
  0x34   : > { %377 = vrot.lane.b32.xlu1 %v308_v31, %s1732_s7  ;;  %277 = vst.msk [vmem:[#allocation2 + $0x2c] sm:$0xf] %vm265_vm1, %v244_v61  ;;  %276 = vst.msk [vmem:[#allocation2 + $0x28] sm:$0xf] %vm265_vm1, %v243_v62  ;;  %v312_v63 = vld [vmem:[%s1845_s4 + $0x24] sm:$0xf] }
  0x35   : > { %375 = vrot.lane.b32.xlu0 %v307_v32, %s1732_s7  ;;  %v311_v0 = vld [vmem:[%s1845_s4 + $0x20] sm:$0xf]  ;;  %v260_v1 = vld [vmem:[%s1879_s25 + $0x6c] sm:$0xf]  ;;  %v259_v2 = vld [vmem:[%s1879_s25 + $0x68] sm:$0xf] }
  0x36   : > { %293 = vst.msk [vmem:[#allocation2 + $0x6c] sm:$0xf] %vm265_vm1, %v260_v1  ;;  %292 = vst.msk [vmem:[#allocation2 + $0x68] sm:$0xf] %vm265_vm1, %v259_v2  ;;  %v328_v3 = vld [vmem:[%s1845_s4 + $0x64] sm:$0xf] }
  0x37   : > { %v327_v4 = vld [vmem:[%s1845_s4 + $0x60] sm:$0xf]  ;;  %v314_v5 = vld [vmem:[%s1845_s4 + $0x2c] sm:$0xf]  ;;  %v313_v6 = vld [vmem:[%s1845_s4 + $0x28] sm:$0xf] }
  0x38   : > { %409 = vrot.lane.b32.xlu1 %v324_v42, %s1732_s7  ;;  %v330_v7 = vld [vmem:[%s1845_s4 + $0x6c] sm:$0xf]  ;;  %v329_v8 = vld [vmem:[%s1845_s4 + $0x68] sm:$0xf]  ;;  %v510_v9 = vld [vmem:[%s1869_s21 + $0x24] sm:$0xf] }
  0x39   : > { %407 = vrot.lane.b32.xlu0 %v323_v43, %s1732_s7  ;;  %v509_v10 = vld [vmem:[%s1869_s21 + $0x20] sm:$0xf]  ;;  %v526_v11 = vld [vmem:[%s1869_s21 + $0x64] sm:$0xf]  ;;  %v246_v13 = vld [vmem:[%s1879_s25 + $0x34] sm:$0xf] }
  0x3a   : > { %v525_v12 = vld [vmem:[%s1869_s21 + $0x60] sm:$0xf]  ;;  %v245_v14 = vld [vmem:[%s1879_s25 + $0x30] sm:$0xf]  ;;  %279 = vst.msk [vmem:[#allocation2 + $0x34] sm:$0xf] %vm265_vm1, %v246_v13 }
  0x3b   : > { %278 = vst.msk [vmem:[#allocation2 + $0x30] sm:$0xf] %vm265_vm1, %v245_v14  ;;  %v512_v15 = vld [vmem:[%s1869_s21 + $0x2c] sm:$0xf]  ;;  %v511_v16 = vld [vmem:[%s1869_s21 + $0x28] sm:$0xf] }
  0x3c   : > { %381 = vrot.lane.b32.xlu1 %v310_v45, %s1732_s7  ;;  %v262_v17 = vld [vmem:[%s1879_s25 + $0x74] sm:$0xf]  ;;  %v261_v18 = vld [vmem:[%s1879_s25 + $0x70] sm:$0xf]  ;;  %v528_v19 = vld [vmem:[%s1869_s21 + $0x6c] sm:$0xf] }
  0x3d   : > { %379 = vrot.lane.b32.xlu0 %v309_v46, %s1732_s7  ;;  %295 = vst.msk [vmem:[#allocation2 + $0x74] sm:$0xf] %vm265_vm1, %v262_v17  ;;  %294 = vst.msk [vmem:[#allocation2 + $0x70] sm:$0xf] %vm265_vm1, %v261_v18  ;;  %v527_v20 = vld [vmem:[%s1869_s21 + $0x68] sm:$0xf] }
  0x3e   : > { %v248_v21 = vld [vmem:[%s1879_s25 + $0x3c] sm:$0xf]  ;;  %v247_v22 = vld [vmem:[%s1879_s25 + $0x38] sm:$0xf]  ;;  %v316_v23 = vld [vmem:[%s1845_s4 + $0x34] sm:$0xf] }
  0x3f   : > { %281 = vst.msk [vmem:[#allocation2 + $0x3c] sm:$0xf] %vm265_vm1, %v248_v21  ;;  %280 = vst.msk [vmem:[#allocation2 + $0x38] sm:$0xf] %vm265_vm1, %v247_v22  ;;  %v315_v24 = vld [vmem:[%s1845_s4 + $0x30] sm:$0xf] }
  0x40   : > { %413 = vrot.lane.b32.xlu1 %v326_v47, %s1732_s7  ;;  %v264_v25 = vld [vmem:[%s1879_s25 + $0x7c] sm:$0xf]  ;;  %v263_v26 = vld [vmem:[%s1879_s25 + $0x78] sm:$0xf]  ;;  %v332_v27 = vld [vmem:[%s1845_s4 + $0x74] sm:$0xf] }
  0x41   : > { %411 = vrot.lane.b32.xlu0 %v325_v48, %s1732_s7  ;;  %297 = vst.msk [vmem:[#allocation2 + $0x7c] sm:$0xf] %vm265_vm1, %v264_v25  ;;  %296 = vst.msk [vmem:[#allocation2 + $0x78] sm:$0xf] %vm265_vm1, %v263_v26  ;;  %v331_v28 = vld [vmem:[%s1845_s4 + $0x70] sm:$0xf] }
  0x42   : > { %v318_v29 = vld [vmem:[%s1845_s4 + $0x3c] sm:$0xf]  ;;  %v317_v30 = vld [vmem:[%s1845_s4 + $0x38] sm:$0xf]  ;;  %v514_v33 = vld [vmem:[%s1869_s21 + $0x34] sm:$0xf] }
  0x43   : > { %v334_v31 = vld [vmem:[%s1845_s4 + $0x7c] sm:$0xf]  ;;  %v333_v32 = vld [vmem:[%s1845_s4 + $0x78] sm:$0xf]  ;;  %v513_v34 = vld [vmem:[%s1869_s21 + $0x30] sm:$0xf] }
  0x44   : > { %575 = vrot.lane.b32.xlu1 %v506_v49, %s1733_s24  ;;  %v530_v35 = vld [vmem:[%s1869_s21 + $0x74] sm:$0xf]  ;;  %v529_v36 = vld [vmem:[%s1869_s21 + $0x70] sm:$0xf]  ;;  %v516_v39 = vld [vmem:[%s1869_s21 + $0x3c] sm:$0xf] }
  0x45   : > { %573 = vrot.lane.b32.xlu0 %v505_v50, %s1733_s24  ;;  %v515_v40 = vld [vmem:[%s1869_s21 + $0x38] sm:$0xf]  ;;  %v532_v43 = vld [vmem:[%s1869_s21 + $0x7c] sm:$0xf]  ;;  %vm661_vm3 = vcmask 289984   ;;  %s1342_s4 = sshll.u32 %s1713_s12, 5 }
  0x46   : > { %v531_v44 = vld [vmem:[%s1869_s21 + $0x78] sm:$0xf]  ;;  %p187_p6 = scmp.lt.s32.totalorder %s1342_s4, 63 }
  0x48   : > { %607 = vrot.lane.b32.xlu1 %v522_v51, %s1733_s24  ;;  %s2221_s4 = smov (!%p187_p6, %s1342_s4), 63 }
  0x49   : > { %605 = vrot.lane.b32.xlu0 %v521_v52, %s1733_s24 }
  0x4c   : > { %579 = vrot.lane.b32.xlu1 %v508_v55, %s1733_s24 }
  0x4d   : > { %577 = vrot.lane.b32.xlu0 %v507_v56, %s1733_s24 }
  0x50   : > { %611 = vrot.lane.b32.xlu1 %v524_v59, %s1733_s24 }
  0x51   : > { %609 = vrot.lane.b32.xlu0 %v523_v60, %s1733_s24 }
  0x54   : > { %385 = vrot.lane.b32.xlu1 %v312_v63, %s1732_s7 }
  0x55   : > { %383 = vrot.lane.b32.xlu0 %v311_v0, %s1732_s7 }
  0x58   : > { %417 = vrot.lane.b32.xlu1 %v328_v3, %s1732_s7 }
  0x59   : > { %415 = vrot.lane.b32.xlu0 %v327_v4, %s1732_s7 }
  0x5c   : > { %389 = vrot.lane.b32.xlu1 %v314_v5, %s1732_s7 }
  0x5d   : > { %387 = vrot.lane.b32.xlu0 %v313_v6, %s1732_s7 }
  0x60   : > { %421 = vrot.lane.b32.xlu1 %v330_v7, %s1732_s7 }
  0x61   : > { %419 = vrot.lane.b32.xlu0 %v329_v8, %s1732_s7 }
  0x64   : > { %583 = vrot.lane.b32.xlu1 %v510_v9, %s1733_s24 }
  0x65   : > { %581 = vrot.lane.b32.xlu0 %v509_v10, %s1733_s24 }
  0x68   : > { %615 = vrot.lane.b32.xlu1 %v526_v11, %s1733_s24 }
  0x69   : > { %613 = vrot.lane.b32.xlu0 %v525_v12, %s1733_s24 }
  0x6c   : > { %587 = vrot.lane.b32.xlu1 %v512_v15, %s1733_s24 }
  0x6d   : > { %585 = vrot.lane.b32.xlu0 %v511_v16, %s1733_s24 }
  0x70   : > { %619 = vrot.lane.b32.xlu1 %v528_v19, %s1733_s24 }
  0x71   : > { %617 = vrot.lane.b32.xlu0 %v527_v20, %s1733_s24 }
  0x74   : > { %393 = vrot.lane.b32.xlu1 %v316_v23, %s1732_s7 }
  0x75   : > { %391 = vrot.lane.b32.xlu0 %v315_v24, %s1732_s7 }
  0x78   : > { %425 = vrot.lane.b32.xlu1 %v332_v27, %s1732_s7 }
  0x79   : > { %423 = vrot.lane.b32.xlu0 %v331_v28, %s1732_s7 }
  0x7c   : > { %397 = vrot.lane.b32.xlu1 %v318_v29, %s1732_s7 }
  0x7d   : > { %395 = vrot.lane.b32.xlu0 %v317_v30, %s1732_s7 }
  0x80   : > { %429 = vrot.lane.b32.xlu1 %v334_v31, %s1732_s7 }
  0x81   : > { %427 = vrot.lane.b32.xlu0 %v333_v32, %s1732_s7  ;;  %s1343_s7 = sshll.u32 %s2219_s13, 6 }
  0x82   : > { %s190_s10 = sadd.s32 %s1343_s7, %s2221_s4 }
  0x83   : > { %s1344_s11 = sshll.u32 %s190_s10, 2 }
  0x84   : > { %591 = vrot.lane.b32.xlu1 %v514_v33, %s1733_s24  ;;  %s2144_s20 = scalar_lea.vmem %s2207_s3, %s1344_s11 }
  0x85   : > { %589 = vrot.lane.b32.xlu0 %v513_v34, %s1733_s24 }
  0x86   : > { %v400_v37 = vpop.permute.xlu1 %399 }
  0x87   : > { %v368_v38 = vpop.permute.xlu0 %367  ;;  %480 = vst.msk [vmem:[#allocation2 + $0x40] sm:$0xf] %vm463_vm2, %v400_v37 }
  0x88   : > { %464 = vst.msk [vmem:[#allocation2] sm:$0xf] %vm463_vm2, %v368_v38  ;;  %623 = vrot.lane.b32.xlu1 %v530_v35, %s1733_s24 }
  0x89   : > { %621 = vrot.lane.b32.xlu0 %v529_v36, %s1733_s24 }
  0x8a   : > { %v402_v41 = vpop.permute.xlu1 %401 }
  0x8b   : > { %v370_v42 = vpop.permute.xlu0 %369  ;;  %481 = vst.msk [vmem:[#allocation2 + $0x44] sm:$0xf] %vm463_vm2, %v402_v41 }
  0x8c   : > { %465 = vst.msk [vmem:[#allocation2 + $0x4] sm:$0xf] %vm463_vm2, %v370_v42  ;;  %595 = vrot.lane.b32.xlu1 %v516_v39, %s1733_s24 }
  0x8d   : > { %593 = vrot.lane.b32.xlu0 %v515_v40, %s1733_s24 }
  0x8e   : > { %v374_v45 = vpop.permute.xlu1 %373 }
  0x8f   : > { %v372_v46 = vpop.permute.xlu0 %371  ;;  %467 = vst.msk [vmem:[#allocation2 + $0xc] sm:$0xf] %vm463_vm2, %v374_v45 }
  0x90   : > { %466 = vst.msk [vmem:[#allocation2 + $0x8] sm:$0xf] %vm463_vm2, %v372_v46  ;;  %627 = vrot.lane.b32.xlu1 %v532_v43, %s1733_s24 }
  0x91   : > { %625 = vrot.lane.b32.xlu0 %v531_v44, %s1733_s24 }
  0x92   : > { %v406_v47 = vpop.permute.xlu1 %405 }
  0x93   : > { %v404_v48 = vpop.permute.xlu0 %403  ;;  %483 = vst.msk [vmem:[#allocation2 + $0x4c] sm:$0xf] %vm463_vm2, %v406_v47 }
  0x94   : > { %482 = vst.msk [vmem:[#allocation2 + $0x48] sm:$0xf] %vm463_vm2, %v404_v48 }
  0x96   : > { %v568_v49 = vpop.permute.xlu1 %567 }
  0x97   : > { %v566_v50 = vpop.permute.xlu0 %565  ;;  %663 = vst.msk [vmem:[#allocation2 + $0x4] sm:$0xf] %vm661_vm3, %v568_v49 }
  0x98   : > { %662 = vst.msk [vmem:[#allocation2] sm:$0xf] %vm661_vm3, %v566_v50 }
  0x9a   : > { %v600_v51 = vpop.permute.xlu1 %599 }
  0x9b   : > { %v598_v52 = vpop.permute.xlu0 %597  ;;  %679 = vst.msk [vmem:[#allocation2 + $0x44] sm:$0xf] %vm661_vm3, %v600_v51 }
  0x9c   : > { %678 = vst.msk [vmem:[#allocation2 + $0x40] sm:$0xf] %vm661_vm3, %v598_v52 }
  0x9e   : > { %v572_v53 = vpop.permute.xlu1 %571 }
  0x9f   : > { %v570_v54 = vpop.permute.xlu0 %569  ;;  %v1674_v55 = vld [vmem:[#allocation2] sm:$0xff]   ;;  %665 = vst.msk [vmem:[#allocation2 + $0xc] sm:$0xf] %vm661_vm3, %v572_v53 }
  0xa0   : > { %664 = vst.msk [vmem:[#allocation2 + $0x8] sm:$0xf] %vm661_vm3, %v570_v54  ;;  %1575 = vmatprep.mubr.bf16.mxu0 %v1674_v55 }
  0xa2   : > { %v604_v56 = vpop.permute.xlu1 %603 }
  0xa3   : > { %v602_v57 = vpop.permute.xlu0 %601  ;;  %v1676_v58 = vld [vmem:[#allocation2 + $0x40] sm:$0xff]   ;;  %681 = vst.msk [vmem:[#allocation2 + $0x4c] sm:$0xf] %vm661_vm3, %v604_v56 }
  0xa4   : > { %680 = vst.msk [vmem:[#allocation2 + $0x48] sm:$0xf] %vm661_vm3, %v602_v57  ;;  %1591 = vmatprep.mubr.bf16.mxu1 %v1676_v58  ;;  %v2134_v58 = vld [vmem:[%s2206_s2] ss:$0 sm:$0xff] }
  0xa6   : > { %v378_v59 = vpop.permute.xlu1 %377 }
  0xa7   : > { %v376_v60 = vpop.permute.xlu0 %375  ;;  %v1677_v61 = vld [vmem:[#allocation2 + $0x8] sm:$0xff]   ;;  %469 = vst.msk [vmem:[#allocation2 + $0x14] sm:$0xf] %vm463_vm2, %v378_v59 }
  0xa8   : > { %468 = vst.msk [vmem:[#allocation2 + $0x10] sm:$0xf] %vm463_vm2, %v376_v60  ;;  %1576 = vmatmul.mubr.bf16.vlgmr.msra.gmra.mxu0 %v1677_v61 }
  0xaa   : > { %v410_v62 = vpop.permute.xlu1 %409 }
  0xab   : > { %v408_v63 = vpop.permute.xlu0 %407  ;;  %v1678_v0 = vld [vmem:[#allocation2 + $0x48] sm:$0xff]   ;;  %485 = vst.msk [vmem:[#allocation2 + $0x54] sm:$0xf] %vm463_vm2, %v410_v62 }
  0xac   : > { %484 = vst.msk [vmem:[#allocation2 + $0x50] sm:$0xf] %vm463_vm2, %v408_v63  ;;  %1592 = vmatmul.mubr.bf16.vlgmr.msra.gmra.mxu1 %v1678_v0 }
  0xae   : > { %v382_v1 = vpop.permute.xlu1 %381 }
  0xaf   : > { %v380_v2 = vpop.permute.xlu0 %379  ;;  %471 = vst.msk [vmem:[#allocation2 + $0x1c] sm:$0xf] %vm463_vm2, %v382_v1 }
  0xb0   : > { %470 = vst.msk [vmem:[#allocation2 + $0x18] sm:$0xf] %vm463_vm2, %v380_v2 }
  0xb2   : > { %v414_v3 = vpop.permute.xlu1 %413 }
  0xb3   : > { %v412_v4 = vpop.permute.xlu0 %411  ;;  %487 = vst.msk [vmem:[#allocation2 + $0x5c] sm:$0xf] %vm463_vm2, %v414_v3 }
  0xb4   : > { %486 = vst.msk [vmem:[#allocation2 + $0x58] sm:$0xf] %vm463_vm2, %v412_v4 }
  0xb6   : > { %v576_v5 = vpop.permute.xlu1 %575 }
  0xb7   : > { %v574_v6 = vpop.permute.xlu0 %573  ;;  %667 = vst.msk [vmem:[#allocation2 + $0x14] sm:$0xf] %vm661_vm3, %v576_v5 }
  0xb8   : > { %666 = vst.msk [vmem:[#allocation2 + $0x10] sm:$0xf] %vm661_vm3, %v574_v6 }
  0xba   : > { %v608_v7 = vpop.permute.xlu1 %607 }
  0xbb   : > { %v606_v8 = vpop.permute.xlu0 %605  ;;  %683 = vst.msk [vmem:[#allocation2 + $0x54] sm:$0xf] %vm661_vm3, %v608_v7 }
  0xbc   : > { %682 = vst.msk [vmem:[#allocation2 + $0x50] sm:$0xf] %vm661_vm3, %v606_v8 }
  0xbe   : > { %v580_v9 = vpop.permute.xlu1 %579 }
  0xbf   : > { %v578_v10 = vpop.permute.xlu0 %577  ;;  %v1679_v11 = vld [vmem:[#allocation2 + $0x10] sm:$0xff]   ;;  %669 = vst.msk [vmem:[#allocation2 + $0x1c] sm:$0xf] %vm661_vm3, %v580_v9 }
  0xc0   : > { %668 = vst.msk [vmem:[#allocation2 + $0x18] sm:$0xf] %vm661_vm3, %v578_v10  ;;  %1579 = vmatprep.mubr.bf16.mxu0 %v1679_v11 }
  0xc2   : > { %v612_v12 = vpop.permute.xlu1 %611 }
  0xc3   : > { %v610_v13 = vpop.permute.xlu0 %609  ;;  %v1680_v14 = vld [vmem:[#allocation2 + $0x50] sm:$0xff]   ;;  %685 = vst.msk [vmem:[#allocation2 + $0x5c] sm:$0xf] %vm661_vm3, %v612_v12 }
  0xc4   : > { %684 = vst.msk [vmem:[#allocation2 + $0x58] sm:$0xf] %vm661_vm3, %v610_v13  ;;  %1595 = vmatprep.mubr.bf16.mxu1 %v1680_v14 }
  0xc6   : > { %v386_v15 = vpop.permute.xlu1 %385 }
  0xc7   : > { %v384_v16 = vpop.permute.xlu0 %383  ;;  %v1681_v17 = vld [vmem:[#allocation2 + $0x18] sm:$0xff]   ;;  %473 = vst.msk [vmem:[#allocation2 + $0x24] sm:$0xf] %vm463_vm2, %v386_v15 }
  0xc8   : > { %472 = vst.msk [vmem:[#allocation2 + $0x20] sm:$0xf] %vm463_vm2, %v384_v16  ;;  %1580 = vmatmul.mubr.bf16.gmra.mxu0 %v1681_v17 }
  0xca   : > { %v418_v18 = vpop.permute.xlu1 %417 }
  0xcb   : > { %v416_v19 = vpop.permute.xlu0 %415  ;;  %v1682_v20 = vld [vmem:[#allocation2 + $0x58] sm:$0xff]   ;;  %489 = vst.msk [vmem:[#allocation2 + $0x64] sm:$0xf] %vm463_vm2, %v418_v18 }
  0xcc   : > { %488 = vst.msk [vmem:[#allocation2 + $0x60] sm:$0xf] %vm463_vm2, %v416_v19  ;;  %1596 = vmatmul.mubr.bf16.gmra.mxu1 %v1682_v20 }
  0xce   : > { %v390_v21 = vpop.permute.xlu1 %389 }
  0xcf   : > { %v388_v22 = vpop.permute.xlu0 %387  ;;  %475 = vst.msk [vmem:[#allocation2 + $0x2c] sm:$0xf] %vm463_vm2, %v390_v21 }
  0xd0   : > { %474 = vst.msk [vmem:[#allocation2 + $0x28] sm:$0xf] %vm463_vm2, %v388_v22 }
  0xd2   : > { %v422_v23 = vpop.permute.xlu1 %421 }
  0xd3   : > { %v420_v24 = vpop.permute.xlu0 %419  ;;  %491 = vst.msk [vmem:[#allocation2 + $0x6c] sm:$0xf] %vm463_vm2, %v422_v23 }
  0xd4   : > { %490 = vst.msk [vmem:[#allocation2 + $0x68] sm:$0xf] %vm463_vm2, %v420_v24 }
  0xd6   : > { %v584_v25 = vpop.permute.xlu1 %583 }
  0xd7   : > { %v582_v26 = vpop.permute.xlu0 %581  ;;  %671 = vst.msk [vmem:[#allocation2 + $0x24] sm:$0xf] %vm661_vm3, %v584_v25 }
  0xd8   : > { %670 = vst.msk [vmem:[#allocation2 + $0x20] sm:$0xf] %vm661_vm3, %v582_v26 }
  0xda   : > { %v616_v27 = vpop.permute.xlu1 %615 }
  0xdb   : > { %v614_v28 = vpop.permute.xlu0 %613  ;;  %687 = vst.msk [vmem:[#allocation2 + $0x64] sm:$0xf] %vm661_vm3, %v616_v27 }
  0xdc   : > { %686 = vst.msk [vmem:[#allocation2 + $0x60] sm:$0xf] %vm661_vm3, %v614_v28 }
  0xde   : > { %v588_v29 = vpop.permute.xlu1 %587 }
  0xdf   : > { %v586_v30 = vpop.permute.xlu0 %585  ;;  %v1683_v31 = vld [vmem:[#allocation2 + $0x20] sm:$0xff]   ;;  %673 = vst.msk [vmem:[#allocation2 + $0x2c] sm:$0xf] %vm661_vm3, %v588_v29 }
  0xe0   : > { %672 = vst.msk [vmem:[#allocation2 + $0x28] sm:$0xf] %vm661_vm3, %v586_v30  ;;  %1583 = vmatprep.mubr.bf16.mxu0 %v1683_v31 }
  0xe2   : > { %v620_v32 = vpop.permute.xlu1 %619 }
  0xe3   : > { %v618_v33 = vpop.permute.xlu0 %617  ;;  %v1684_v34 = vld [vmem:[#allocation2 + $0x60] sm:$0xff]   ;;  %689 = vst.msk [vmem:[#allocation2 + $0x6c] sm:$0xf] %vm661_vm3, %v620_v32 }
  0xe4   : > { %688 = vst.msk [vmem:[#allocation2 + $0x68] sm:$0xf] %vm661_vm3, %v618_v33  ;;  %1599 = vmatprep.mubr.bf16.mxu1 %v1684_v34 }
  0xe6   : > { %v394_v35 = vpop.permute.xlu1 %393 }
  0xe7   : > { %v392_v36 = vpop.permute.xlu0 %391  ;;  %v1685_v37 = vld [vmem:[#allocation2 + $0x28] sm:$0xff]   ;;  %477 = vst.msk [vmem:[#allocation2 + $0x34] sm:$0xf] %vm463_vm2, %v394_v35 }
  0xe8   : > { %476 = vst.msk [vmem:[#allocation2 + $0x30] sm:$0xf] %vm463_vm2, %v392_v36  ;;  %1584 = vmatmul.mubr.bf16.gmra.mxu0 %v1685_v37 }
  0xea   : > { %v426_v38 = vpop.permute.xlu1 %425 }
  0xeb   : > { %v424_v39 = vpop.permute.xlu0 %423  ;;  %v1686_v40 = vld [vmem:[#allocation2 + $0x68] sm:$0xff]   ;;  %493 = vst.msk [vmem:[#allocation2 + $0x74] sm:$0xf] %vm463_vm2, %v426_v38 }
  0xec   : > { %492 = vst.msk [vmem:[#allocation2 + $0x70] sm:$0xf] %vm463_vm2, %v424_v39  ;;  %1600 = vmatmul.mubr.bf16.gmra.mxu1 %v1686_v40 }
  0xee   : > { %v398_v41 = vpop.permute.xlu1 %397 }
  0xef   : > { %v396_v42 = vpop.permute.xlu0 %395  ;;  %479 = vst.msk [vmem:[#allocation2 + $0x3c] sm:$0xf] %vm463_vm2, %v398_v41 }
  0xf0   : > { %478 = vst.msk [vmem:[#allocation2 + $0x38] sm:$0xf] %vm463_vm2, %v396_v42 }
  0xf2   : > { %v430_v43 = vpop.permute.xlu1 %429 }
  0xf3   : > { %v428_v44 = vpop.permute.xlu0 %427  ;;  %495 = vst.msk [vmem:[#allocation2 + $0x7c] sm:$0xf] %vm463_vm2, %v430_v43 }
  0xf4   : > { %494 = vst.msk [vmem:[#allocation2 + $0x78] sm:$0xf] %vm463_vm2, %v428_v44 }
  0xf6   : > { %v592_v45 = vpop.permute.xlu1 %591 }
  0xf7   : > { %v590_v46 = vpop.permute.xlu0 %589  ;;  %675 = vst.msk [vmem:[#allocation2 + $0x34] sm:$0xf] %vm661_vm3, %v592_v45 }
  0xf8   : > { %674 = vst.msk [vmem:[#allocation2 + $0x30] sm:$0xf] %vm661_vm3, %v590_v46 }
  0xfa   : > { %v624_v47 = vpop.permute.xlu1 %623 }
  0xfb   : > { %v622_v48 = vpop.permute.xlu0 %621  ;;  %691 = vst.msk [vmem:[#allocation2 + $0x74] sm:$0xf] %vm661_vm3, %v624_v47 }
  0xfc   : > { %690 = vst.msk [vmem:[#allocation2 + $0x70] sm:$0xf] %vm661_vm3, %v622_v48 }
  0xfe   : > { %v596_v49 = vpop.permute.xlu1 %595 }
  0xff   : > { %v594_v50 = vpop.permute.xlu0 %593  ;;  %v1687_v51 = vld [vmem:[#allocation2 + $0x30] sm:$0xff]   ;;  %677 = vst.msk [vmem:[#allocation2 + $0x3c] sm:$0xf] %vm661_vm3, %v596_v49 }
 0x100   : > { %676 = vst.msk [vmem:[#allocation2 + $0x38] sm:$0xf] %vm661_vm3, %v594_v50  ;;  %1587 = vmatprep.mubr.bf16.mxu0 %v1687_v51 }
 0x102   : > { %v628_v52 = vpop.permute.xlu1 %627 }
 0x103   : > { %v626_v53 = vpop.permute.xlu0 %625  ;;  %v1688_v54 = vld [vmem:[#allocation2 + $0x70] sm:$0xff]   ;;  %693 = vst.msk [vmem:[#allocation2 + $0x7c] sm:$0xf] %vm661_vm3, %v628_v52 }
 0x104   : > { %692 = vst.msk [vmem:[#allocation2 + $0x78] sm:$0xf] %vm661_vm3, %v626_v53  ;;  %1603 = vmatprep.mubr.bf16.mxu1 %v1688_v54 }
 0x107   : > { %v1689_v55 = vld [vmem:[#allocation2 + $0x38] sm:$0xff]  }
 0x108   : > { %1588 = vmatmul.mubr.bf16.gmra.mxu0 %v1689_v55 }
 0x10b   : > { %v1690_v56 = vld [vmem:[#allocation2 + $0x78] sm:$0xff]  }
 0x10c   : > { %1604 = vmatmul.mubr.bf16.gmra.mxu1 %v1690_v56 }
 0x168   : > { %v1577_v57 = vpop.f32.mrf.mxu0 }
 0x169   : > { %v936_v60 = vadd.f32 %v1577_v57, %v2134_v58 }
 0x16a   : > { %v927_v59 = vpop.f32.mrf.mxu0 }
 0x16b   : > { %v928_v61 = vadd.f32 %v2134_v58, %v927_v59  ;;  %v1056_v3 = vmax.f32 %v936_v60, 0.0 }
 0x16c   : > { %v1578_v62 = vpop.f32.mrf.mxu0  ;;  %v1593_v63 = vpop.f32.mrf.mxu1 }
 0x16d   : > { %v939_v0 = vadd.f32 %v1578_v62, %v2134_v58  ;;  %v1000_v5 = vadd.f32 %v1593_v63, %v2134_v58  ;;  %v1054_v7 = vmax.f32 %v928_v61, 0.0 }
 0x16e   : > { %v930_v1 = vpop.f32.mrf.mxu0  ;;  %v991_v2 = vpop.f32.mrf.mxu1 }
 0x16f   : > { %v1057_v4 = vmax.f32 %v939_v0, 0.0  ;;  %v931_v6 = vadd.f32 %v2134_v58, %v930_v1  ;;  %v992_v11 = vadd.f32 %v2134_v58, %v991_v2  ;;  %v1072_v14 = vmax.f32 %v1000_v5, 0.0 }
 0x170   : > { %v1594_v8 = vpop.f32.mrf.mxu1 }
 0x171   : > { %v1448_v9 = vpack.c.bf16 %v1057_v4, %v1056_v3  ;;  %v1055_v10 = vmax.f32 %v931_v6, 0.0  ;;  %v1003_v12 = vadd.f32 %v1594_v8, %v2134_v58  ;;  %v1070_v18 = vmax.f32 %v992_v11, 0.0 }
 0x172   : > { %v994_v13 = vpop.f32.mrf.mxu1 }
 0x173   : > { %1520 = vst [vmem:[%s2144_s20 + $0x8] sm:$0xff] %v1448_v9   ;;  %v1443_v15 = vpack.c.bf16 %v1055_v10, %v1054_v7  ;;  %v1073_v16 = vmax.f32 %v1003_v12, 0.0  ;;  %v995_v17 = vadd.f32 %v2134_v58, %v994_v13 }
 0x175   : > { %1444 = vst [vmem:[%s2144_s20] sm:$0xff] %v1443_v15   ;;  %v1488_v19 = vpack.c.bf16 %v1073_v16, %v1072_v14  ;;  %v1071_v20 = vmax.f32 %v995_v17, 0.0 }
 0x177   : > { %1528 = vst [vmem:[%s2144_s20 + $0x48] sm:$0xff] %v1488_v19   ;;  %v1483_v21 = vpack.c.bf16 %v1071_v20, %v1070_v18 }
 0x179   : > { %1527 = vst [vmem:[%s2144_s20 + $0x40] sm:$0xff] %v1483_v21  }
 0x188   : > { %v1581_v22 = vpop.f32.mrf.mxu0 }
 0x189   : > { %v952_v24 = vadd.f32 %v1581_v22, %v2134_v58 }
 0x18a   : > { %v943_v23 = vpop.f32.mrf.mxu0 }
 0x18b   : > { %v944_v25 = vadd.f32 %v2134_v58, %v943_v23  ;;  %v1060_v31 = vmax.f32 %v952_v24, 0.0 }
 0x18c   : > { %v1582_v26 = vpop.f32.mrf.mxu0  ;;  %v1597_v27 = vpop.f32.mrf.mxu1 }
 0x18d   : > { %v955_v28 = vadd.f32 %v1582_v26, %v2134_v58  ;;  %v1016_v33 = vadd.f32 %v1597_v27, %v2134_v58  ;;  %v1058_v35 = vmax.f32 %v944_v25, 0.0 }
 0x18e   : > { %v946_v29 = vpop.f32.mrf.mxu0  ;;  %v1007_v30 = vpop.f32.mrf.mxu1 }
 0x18f   : > { %v1061_v32 = vmax.f32 %v955_v28, 0.0  ;;  %v947_v34 = vadd.f32 %v2134_v58, %v946_v29  ;;  %v1008_v39 = vadd.f32 %v2134_v58, %v1007_v30  ;;  %v1076_v42 = vmax.f32 %v1016_v33, 0.0 }
 0x190   : > { %v1598_v36 = vpop.f32.mrf.mxu1 }
 0x191   : > { %v1458_v37 = vpack.c.bf16 %v1061_v32, %v1060_v31  ;;  %v1059_v38 = vmax.f32 %v947_v34, 0.0  ;;  %v1019_v40 = vadd.f32 %v1598_v36, %v2134_v58  ;;  %v1074_v46 = vmax.f32 %v1008_v39, 0.0 }
 0x192   : > { %v1010_v41 = vpop.f32.mrf.mxu1 }
 0x193   : > { %1522 = vst [vmem:[%s2144_s20 + $0x18] sm:$0xff] %v1458_v37   ;;  %v1453_v43 = vpack.c.bf16 %v1059_v38, %v1058_v35  ;;  %v1077_v44 = vmax.f32 %v1019_v40, 0.0  ;;  %v1011_v45 = vadd.f32 %v2134_v58, %v1010_v41 }
 0x195   : > { %1521 = vst [vmem:[%s2144_s20 + $0x10] sm:$0xff] %v1453_v43   ;;  %v1498_v47 = vpack.c.bf16 %v1077_v44, %v1076_v42  ;;  %v1075_v48 = vmax.f32 %v1011_v45, 0.0 }
 0x197   : > { %1530 = vst [vmem:[%s2144_s20 + $0x58] sm:$0xff] %v1498_v47   ;;  %v1493_v49 = vpack.c.bf16 %v1075_v48, %v1074_v46 }
 0x199   : > { %1529 = vst [vmem:[%s2144_s20 + $0x50] sm:$0xff] %v1493_v49  }
 0x1a8   : > { %v1585_v50 = vpop.f32.mrf.mxu0 }
 0x1a9   : > { %v968_v52 = vadd.f32 %v1585_v50, %v2134_v58 }
 0x1aa   : > { %v959_v51 = vpop.f32.mrf.mxu0 }
 0x1ab   : > { %v960_v53 = vadd.f32 %v2134_v58, %v959_v51  ;;  %v1064_v60 = vmax.f32 %v968_v52, 0.0 }
 0x1ac   : > { %v1586_v54 = vpop.f32.mrf.mxu0  ;;  %v1601_v55 = vpop.f32.mrf.mxu1 }
 0x1ad   : > { %v971_v56 = vadd.f32 %v1586_v54, %v2134_v58  ;;  %v1032_v62 = vadd.f32 %v1601_v55, %v2134_v58  ;;  %v1062_v0 = vmax.f32 %v960_v53, 0.0 }
 0x1ae   : > { %v962_v57 = vpop.f32.mrf.mxu0  ;;  %v1023_v59 = vpop.f32.mrf.mxu1 }
 0x1af   : > { %v1065_v61 = vmax.f32 %v971_v56, 0.0  ;;  %v963_v63 = vadd.f32 %v2134_v58, %v962_v57  ;;  %v1024_v4 = vadd.f32 %v2134_v58, %v1023_v59  ;;  %v1080_v7 = vmax.f32 %v1032_v62, 0.0 }
 0x1b0   : > { %v1602_v1 = vpop.f32.mrf.mxu1 }
 0x1b1   : > { %v1468_v2 = vpack.c.bf16 %v1065_v61, %v1064_v60  ;;  %v1063_v3 = vmax.f32 %v963_v63, 0.0  ;;  %v1035_v5 = vadd.f32 %v1602_v1, %v2134_v58  ;;  %v1078_v11 = vmax.f32 %v1024_v4, 0.0 }
 0x1b2   : > { %v1026_v6 = vpop.f32.mrf.mxu1 }
 0x1b3   : > { %1524 = vst [vmem:[%s2144_s20 + $0x28] sm:$0xff] %v1468_v2   ;;  %v1463_v8 = vpack.c.bf16 %v1063_v3, %v1062_v0  ;;  %v1081_v9 = vmax.f32 %v1035_v5, 0.0  ;;  %v1027_v10 = vadd.f32 %v2134_v58, %v1026_v6 }
 0x1b5   : > { %1523 = vst [vmem:[%s2144_s20 + $0x20] sm:$0xff] %v1463_v8   ;;  %v1508_v12 = vpack.c.bf16 %v1081_v9, %v1080_v7  ;;  %v1079_v13 = vmax.f32 %v1027_v10, 0.0 }
 0x1b7   : > { %1532 = vst [vmem:[%s2144_s20 + $0x68] sm:$0xff] %v1508_v12   ;;  %v1503_v14 = vpack.c.bf16 %v1079_v13, %v1078_v11 }
 0x1b9   : > { %1531 = vst [vmem:[%s2144_s20 + $0x60] sm:$0xff] %v1503_v14  }
 0x1c8   : > { %v1589_v15 = vpop.f32.mrf.mxu0 }
 0x1c9   : > { %v984_v17 = vadd.f32 %v1589_v15, %v2134_v58 }
 0x1ca   : > { %v975_v16 = vpop.f32.mrf.mxu0 }
 0x1cb   : > { %v976_v18 = vadd.f32 %v2134_v58, %v975_v16  ;;  %v1068_v24 = vmax.f32 %v984_v17, 0.0 }
 0x1cc   : > { %v1590_v19 = vpop.f32.mrf.mxu0  ;;  %v1605_v20 = vpop.f32.mrf.mxu1 }
 0x1cd   : > { %v987_v21 = vadd.f32 %v1590_v19, %v2134_v58  ;;  %v1048_v26 = vadd.f32 %v1605_v20, %v2134_v58  ;;  %v1066_v28 = vmax.f32 %v976_v18, 0.0 }
 0x1ce   : > { %v978_v22 = vpop.f32.mrf.mxu0  ;;  %v1039_v23 = vpop.f32.mrf.mxu1 }
 0x1cf   : > { %v1069_v25 = vmax.f32 %v987_v21, 0.0  ;;  %v979_v27 = vadd.f32 %v2134_v58, %v978_v22  ;;  %v1040_v32 = vadd.f32 %v2134_v58, %v1039_v23  ;;  %v1084_v35 = vmax.f32 %v1048_v26, 0.0 }
 0x1d0   : > { %v1606_v29 = vpop.f32.mrf.mxu1 }
 0x1d1   : > { %v1478_v30 = vpack.c.bf16 %v1069_v25, %v1068_v24  ;;  %v1067_v31 = vmax.f32 %v979_v27, 0.0  ;;  %v1051_v33 = vadd.f32 %v1606_v29, %v2134_v58  ;;  %v1082_v39 = vmax.f32 %v1040_v32, 0.0 }
 0x1d2   : > { %v1042_v34 = vpop.f32.mrf.mxu1 }
 0x1d3   : > { %1526 = vst [vmem:[%s2144_s20 + $0x38] sm:$0xff] %v1478_v30   ;;  %v1473_v36 = vpack.c.bf16 %v1067_v31, %v1066_v28  ;;  %v1085_v37 = vmax.f32 %v1051_v33, 0.0  ;;  %v1043_v38 = vadd.f32 %v2134_v58, %v1042_v34 }
 0x1d5   : > { %1525 = vst [vmem:[%s2144_s20 + $0x30] sm:$0xff] %v1473_v36   ;;  %v1518_v40 = vpack.c.bf16 %v1085_v37, %v1084_v35  ;;  %v1083_v41 = vmax.f32 %v1043_v38, 0.0 }
 0x1d7   : > { %1534 = vst [vmem:[%s2144_s20 + $0x78] sm:$0xff] %v1518_v40   ;;  %v1513_v42 = vpack.c.bf16 %v1083_v41, %v1082_v39 }
 0x1d9   : > { %1533 = vst [vmem:[%s2144_s20 + $0x70] sm:$0xff] %v1513_v42  }
 0x1da PF: > { %s13_s16 = sadd.s32 1, %s1729_s16   ;;  %s2208_s12 = smov %s1721_s14 }
 0x1db   : > { %p10_p7 = scmp.ge.s32.totalorder %s13_s16, 6   ;;  %s2209_s13 = smov %s1725_s15 }
 0x1dc   : > { %s2210_s14 = smov %s2213_s17  ;;  %s2211_s15 = smov %s2217_s18 }
 0x1dd   :  { %12 = sbr.rel (!%p10_p7) target bundleno = 3 (0x3), region = 65 }

</bundles_post_ra>
